<compile_context>
chip_gen: v7x
topology: tpu7x:2x2x1
jax: 0.10.0
libtpu: 0.0.40
codegen_flags: <defaults>
</compile_context>

<pallas_src>
import jax
import jax.numpy as jnp
from jax.experimental import pallas as pl
from jax.experimental.pallas import tpu as pltpu


def _log_sigmoid(x):
    # Numerically stable log(sigmoid(x)) = min(x, 0) - log1p(exp(-|x|)).
    return jnp.minimum(x, 0.0) - jnp.log1p(jnp.exp(-jnp.abs(x)))


def _make_nsl_kernel(total_rows, block_rows):
    """Kernel producing one per-tile partial loss sum (masked past total_rows)."""

    def kernel(in_ref, out_ref, noise_ref, partial_ref):
        inw = in_ref[...].astype(jnp.float32)        # (TB, E)
        outw = out_ref[...].astype(jnp.float32)      # (TB, E)
        noise = noise_ref[...].astype(jnp.float32)   # (TB, N, E)

        # positive-pair score / loss, kept 2-D (TB, 1)
        pos_score = jnp.sum(outw * inw, axis=-1, keepdims=True)               # (TB, 1)
        pos_loss = _log_sigmoid(pos_score)                                     # (TB, 1)

        # noise scores: reduce over E first, apply the sign on the small (TB, N)
        # result instead of negating the whole (TB, N, E) broadcast.
        neg_score = jnp.sum(noise * inw[:, None, :], axis=-1)                  # (TB, N)
        neg_loss = jnp.sum(_log_sigmoid(-neg_score), axis=-1, keepdims=True)   # (TB, 1)

        per_row = pos_loss + neg_loss                                           # (TB, 1)

        # Mask rows past the true batch size (edge tile reads unspecified data;
        # jnp.where is a select, so NaN/Inf garbage cannot leak into the sum).
        row0 = pl.program_id(0) * block_rows
        row_ids = row0 + jax.lax.broadcasted_iota(jnp.int32, (block_rows, 1), 0)
        per_row = jnp.where(row_ids < total_rows, per_row, 0.0)

        # Per-tile partial sum, written as a lane/sublane-dense (8,128) splat so
        # the output store is a full unmasked tile (no 1-lane vst.msk stores).
        tile_sum = jnp.sum(per_row, axis=0, keepdims=True)                      # (1, 1)
        partial_ref[...] = jnp.broadcast_to(tile_sum.reshape(1, 1, 1), (1, 8, 128))

    return kernel


def _round_up(x, m):
    return ((x + m - 1) // m) * m


def _vmem_capacity_bytes():
    # Generation-aware VMEM capacity (v5e/v6e: 128 MiB, v7x: 64 MiB per TC).
    try:
        return int(pltpu.get_tpu_info().vmem_capacity_bytes)
    except Exception:
        return 64 * 1024 * 1024  # conservative fallback (v7x per-TC VMEM)


def _choose_block_rows(b, n, e, in_itemsize):
    cap = _vmem_capacity_bytes()
    budget = cap // 2  # <=50% of VMEM: leave room for compiler scratch / spills
    # Per-row bytes per pipeline step:
    #   - double-buffered inputs: 2 * itemsize * (2E + N*E)
    #   - f32 compute intermediates (upcast noise, broadcast inw, product): ~3*N*E*4
    per_row = 2 * in_itemsize * (2 * e + n * e) + 12 * n * e + 8
    tb = budget // max(per_row, 1)
    tb = min(tb, 4096, _round_up(b, 8))   # big tiles amortize per-step overhead
    tb = max(8, (tb // 8) * 8)
    return tb


def negative_sampling_loss(in_words_emb, out_words_emb, noise_words_emb, *,
                           block_rows=None, input_dtype=jnp.bfloat16):
    B, N, E = noise_words_emb.shape
    # mirror torch's .view() calls
    in2 = in_words_emb.reshape(B, E)
    out2 = out_words_emb.reshape(B, E)
    noise = noise_words_emb

    # bf16 at the HBM boundary (memory-bound kernel); f32 math inside the kernel.
    if input_dtype is not None:
        in2 = in2.astype(input_dtype)
        out2 = out2.astype(input_dtype)
        noise = noise.astype(input_dtype)

    itemsize = jnp.dtype(noise.dtype).itemsize
    tb = block_rows if block_rows is not None else _choose_block_rows(B, N, E, itemsize)
    tb = max(8, (int(tb) // 8) * 8)

    num_tiles = (B + tb - 1) // tb   # grid may over-run; rows >= B masked in-kernel

    # Per-step VMEM: double-buffered inputs + f32 intermediates + output tile.
    footprint = (2 * itemsize * tb * (2 * E + N * E)
                 + 12 * tb * N * E
                 + 2 * 8 * 128 * 4)
    cap = _vmem_capacity_bytes()
    vmem_limit = int(min(int(0.75 * cap), max(16 * 1024 * 1024, 2 * footprint)))

    cost = pl.CostEstimate(
        flops=2 * B * E * (N + 1) + 8 * B * (N + 1),
        transcendentals=2 * B * (N + 1),                      # exp + log1p per score
        bytes_accessed=itemsize * B * (2 * E + N * E) + 4 * num_tiles * 8 * 128,
    )

    partials = pl.pallas_call(
        _make_nsl_kernel(B, tb),
        out_shape=jax.ShapeDtypeStruct((num_tiles, 8, 128), jnp.float32),
        grid=(num_tiles,),
        in_specs=[
            pl.BlockSpec((tb, E), lambda i: (i, 0)),
            pl.BlockSpec((tb, E), lambda i: (i, 0)),
            pl.BlockSpec((tb, N, E), lambda i: (i, 0, 0)),
        ],
        out_specs=pl.BlockSpec((1, 8, 128), lambda i: (i, 0, 0)),
        compiler_params=pltpu.CompilerParams(
            dimension_semantics=("parallel",),
            vmem_limit_bytes=vmem_limit,
        ),
        cost_estimate=cost,
    )(in2, out2, noise)

    # Tiny final reduction on (num_tiles,) partial sums: -(sum / B).
    return -(jnp.sum(partials[:, 0, 0]) / B)


if __name__ == "__main__":
    key = jax.random.PRNGKey(0)
    k1, k2, k3 = jax.random.split(key, 3)

    # B = batch * window (deliberately not a multiple of the 8-row tile so the
    # masked edge-tile / no-padding path is exercised), N noise words, emb size E.
    B, N, E = 20, 8, 32
    in_words_emb = jax.random.normal(k1, (B, E), dtype=jnp.float32)
    out_words_emb = jax.random.normal(k2, (B, E), dtype=jnp.float32)
    noise_words_emb = jax.random.normal(k3, (B, N, E), dtype=jnp.float32)

    # pure-JAX reference (mirrors the PyTorch forward), computed in f32 on the
    # same bf16-rounded inputs the kernel consumes.
    in_bf = in_words_emb.astype(jnp.bfloat16).astype(jnp.float32)
    out_bf = out_words_emb.astype(jnp.bfloat16).astype(jnp.float32)
    noise_bf = noise_words_emb.astype(jnp.bfloat16).astype(jnp.float32)
    pos = jax.nn.log_sigmoid(jnp.sum(out_bf * in_bf, axis=-1))
    neg = jnp.sum(
        jax.nn.log_sigmoid(
            -jnp.einsum("bne,be->bn", noise_bf, in_bf,
                        precision=jax.lax.Precision.HIGHEST)),
        axis=-1,
    )
    ref = -jnp.mean(pos + neg)

    # 1) explicit small tile -> 3 grid tiles, last one masked (ragged B path)
    loss_tiled = negative_sampling_loss(in_words_emb, out_words_emb,
                                        noise_words_emb, block_rows=8)
    jax.block_until_ready(loss_tiled)
    assert jnp.allclose(loss_tiled, ref, atol=1e-4, rtol=1e-4), (loss_tiled, ref)

    # 2) default (generation-aware) tile sizing path
    loss_auto = negative_sampling_loss(in_words_emb, out_words_emb, noise_words_emb)
    jax.block_until_ready(loss_auto)
    assert jnp.allclose(loss_auto, ref, atol=1e-4, rtol=1e-4), (loss_auto, ref)

    print("KERNEL_OK")
</pallas_src>

<mosaic_0001>
module attributes {stable_mosaic.version = 11 : i64} {
  func.func @kernel(%arg0: i32, %arg1: memref<8x32xbf16, #tpu.memory_space<vmem>>, %arg2: memref<8x32xbf16, #tpu.memory_space<vmem>>, %arg3: memref<8x8x32xbf16, #tpu.memory_space<vmem>>, %arg4: memref<1x8x128xf32, #tpu.memory_space<vmem>>) attributes {dimension_semantics = [#tpu.dimension_semantics<parallel>], iteration_bounds = array<i64: 3>, scalar_prefetch = 0 : i64, scratch_operands = 0 : i64, tpu.core_type = #tpu.core_type<tc>, window_params = [{transform_indices = @transform_0, window_bounds = array<i64: 8, 32>}, {transform_indices = @transform_1, window_bounds = array<i64: 8, 32>}, {transform_indices = @transform_2, window_bounds = array<i64: 8, 8, 32>}, {transform_indices = @transform_3, window_bounds = array<i64: 1, 8, 128>}]} {
    %c0 = arith.constant 0 : index
    %c0_0 = arith.constant 0 : index
    %0 = vector.load %arg1[%c0, %c0_0] : memref<8x32xbf16, #tpu.memory_space<vmem>>, vector<8x32xbf16>
    %1 = arith.extf %0 : vector<8x32xbf16> to vector<8x32xf32>
    %c0_1 = arith.constant 0 : index
    %c0_2 = arith.constant 0 : index
    %2 = vector.load %arg2[%c0_1, %c0_2] : memref<8x32xbf16, #tpu.memory_space<vmem>>, vector<8x32xbf16>
    %3 = arith.extf %2 : vector<8x32xbf16> to vector<8x32xf32>
    %c0_3 = arith.constant 0 : index
    %c0_4 = arith.constant 0 : index
    %c0_5 = arith.constant 0 : index
    %4 = vector.load %arg3[%c0_3, %c0_4, %c0_5] : memref<8x8x32xbf16, #tpu.memory_space<vmem>>, vector<8x8x32xbf16>
    %5 = arith.extf %4 : vector<8x8x32xbf16> to vector<8x8x32xf32>
    %6 = arith.mulf %3, %1 : vector<8x32xf32>
    %cst = arith.constant dense<0.000000e+00> : vector<8xf32>
    %7 = vector.multi_reduction <add>, %6, %cst [1] : vector<8x32xf32> to vector<8xf32>
    %8 = vector.shape_cast %7 : vector<8xf32> to vector<8x1xf32>
    %cst_6 = arith.constant 0.000000e+00 : f32
    %9 = vector.broadcast %cst_6 : f32 to vector<8x1xf32>
    %10 = arith.minimumf %8, %9 : vector<8x1xf32>
    %11 = math.absf %8 : vector<8x1xf32>
    %cst_7 = arith.constant 0.000000e+00 : f32
    %12 = vector.broadcast %cst_7 : f32 to vector<8x1xf32>
    %13 = arith.subf %12, %11 : vector<8x1xf32>
    %14 = math.exp %13 : vector<8x1xf32>
    %15 = math.log1p %14 : vector<8x1xf32>
    %16 = arith.subf %10, %15 : vector<8x1xf32>
    %17 = vector.shape_cast %1 : vector<8x32xf32> to vector<8x1x32xf32>
    %18 = vector.broadcast %17 : vector<8x1x32xf32> to vector<8x8x32xf32>
    %19 = arith.mulf %5, %18 : vector<8x8x32xf32>
    %cst_8 = arith.constant dense<0.000000e+00> : vector<8x8xf32>
    %20 = vector.multi_reduction <add>, %19, %cst_8 [2] : vector<8x8x32xf32> to vector<8x8xf32>
    %cst_9 = arith.constant 0.000000e+00 : f32
    %21 = vector.broadcast %cst_9 : f32 to vector<8x8xf32>
    %22 = arith.subf %21, %20 : vector<8x8xf32>
    %cst_10 = arith.constant 0.000000e+00 : f32
    %23 = vector.broadcast %cst_10 : f32 to vector<8x8xf32>
    %24 = arith.minimumf %22, %23 : vector<8x8xf32>
    %25 = math.absf %22 : vector<8x8xf32>
    %cst_11 = arith.constant 0.000000e+00 : f32
    %26 = vector.broadcast %cst_11 : f32 to vector<8x8xf32>
    %27 = arith.subf %26, %25 : vector<8x8xf32>
    %28 = math.exp %27 : vector<8x8xf32>
    %29 = math.log1p %28 : vector<8x8xf32>
    %30 = arith.subf %24, %29 : vector<8x8xf32>
    %cst_12 = arith.constant dense<0.000000e+00> : vector<8xf32>
    %31 = vector.multi_reduction <add>, %30, %cst_12 [1] : vector<8x8xf32> to vector<8xf32>
    %32 = vector.shape_cast %31 : vector<8xf32> to vector<8x1xf32>
    %33 = arith.addf %16, %32 : vector<8x1xf32>
    %c8_i32 = arith.constant 8 : i32
    %34 = arith.muli %arg0, %c8_i32 : i32
    %35 = tpu.iota {dimensions = array<i32: 0>} : vector<8x1xi32>
    %36 = vector.broadcast %34 : i32 to vector<8x1xi32>
    %37 = arith.addi %36, %35 : vector<8x1xi32>
    %c20_i32 = arith.constant 20 : i32
    %38 = vector.broadcast %c20_i32 : i32 to vector<8x1xi32>
    %39 = arith.cmpi slt, %37, %38 : vector<8x1xi32>
    %cst_13 = arith.constant 0.000000e+00 : f32
    %40 = vector.broadcast %cst_13 : f32 to vector<8x1xf32>
    %41 = arith.select %39, %33, %40 : vector<8x1xi1>, vector<8x1xf32>
    %cst_14 = arith.constant dense<0.000000e+00> : vector<1xf32>
    %42 = vector.multi_reduction <add>, %41, %cst_14 [0] : vector<8x1xf32> to vector<1xf32>
    %43 = vector.shape_cast %42 : vector<1xf32> to vector<1x1xf32>
    %44 = vector.shape_cast %43 : vector<1x1xf32> to vector<1x1x1xf32>
    %45 = vector.shape_cast %44 : vector<1x1x1xf32> to vector<1x1x1xf32>
    %46 = vector.broadcast %45 : vector<1x1x1xf32> to vector<1x8x128xf32>
    %c0_15 = arith.constant 0 : index
    %c0_16 = arith.constant 0 : index
    %c0_17 = arith.constant 0 : index
    %47 = vector.load %arg4[%c0_15, %c0_16, %c0_17] : memref<1x8x128xf32, #tpu.memory_space<vmem>>, vector<1x8x128xf32>
    tpu.vector_store %arg4[%c0_15, %c0_16, %c0_17], %46 {strides = array<i32>} : memref<1x8x128xf32, #tpu.memory_space<vmem>>, vector<1x8x128xf32>,
    return
  }
  func.func @transform_0(%arg0: i32) -> (i32, i32) {
    %c0_i32 = arith.constant 0 : i32
    %c0_i32_0 = arith.constant 0 : i32
    return %arg0, %c0_i32 : i32, i32
  }
  func.func @transform_1(%arg0: i32) -> (i32, i32) {
    %c0_i32 = arith.constant 0 : i32
    %c0_i32_0 = arith.constant 0 : i32
    return %arg0, %c0_i32 : i32, i32
  }
  func.func @transform_2(%arg0: i32) -> (i32, i32, i32) {
    %c0_i32 = arith.constant 0 : i32
    %c0_i32_0 = arith.constant 0 : i32
    %c0_i32_1 = arith.constant 0 : i32
    return %arg0, %c0_i32, %c0_i32_0 : i32, i32, i32
  }
  func.func @transform_3(%arg0: i32) -> (i32, i32, i32) {
    %c0_i32 = arith.constant 0 : i32
    %c0_i32_0 = arith.constant 0 : i32
    %c0_i32_1 = arith.constant 0 : i32
    return %arg0, %c0_i32, %c0_i32_0 : i32, i32, i32
  }
}

</mosaic_0001>

<bundles_post_ra>
// kernel: tpu_custom_call.1
= control target key start
LH: loop header
LB: loop body
LE: loop exit
PB: predicated region body
PF: predicated region fallthrough
CT: control target
= control target key end

     0   :  { %8 = vsyncpa [#allocation3], 0  ;;  %s1435_s0 = inlined_call_operand.hbm [shape: bf16[20,32], index: 0, kind: input, shape index: {}]   ;;  %s1436_s1 = inlined_call_operand.hbm [shape: bf16[20,32], index: 1, kind: input, shape index: {}]   ;;  %s1437_s2 = inlined_call_operand.hbm [shape: bf16[20,8,32], index: 2, kind: input, shape index: {}]   ;;  %s1438_s3 = inlined_call_operand.hbm [shape: f32[3,8,128], index: 3, kind: output, shape index: {}]  }
   0x1   :  { %10 = vsyncpa [#allocation3 + $0x1], 0 }
   0x2   :  { %11 = vsyncpa [#allocation6], 0 }
   0x3   :  { %13 = vsyncpa [#allocation6 + $0x1], 0 }
   0x4   :  { %14 = vsyncpa [#allocation4], 0 }
   0x5   :  { %16 = vsyncpa [#allocation4 + $0x1], 0  ;;  %s1074_s12 = smov 0   ;;  %s1076_s13 = smov 0  }
   0x6   :  { %s1078_s14 = smov 0   ;;  %s1080_s15 = smov 0  }
   0x7 LB: > { %s1095_s16 = sadd.s32 4294967295, %s1045_s15   ;;  %s764_s17 = sadd.s32 4294967294, %s1045_s15   ;;  %s1045_s15 = sphi %s1080_s15, %s1461_s15   ;;  %s1041_s14 = sphi %s1078_s14, %s1460_s14   ;;  %s1037_s13 = sphi %s1076_s13, %s1459_s13   ;;  %s1033_s12 = sphi %s1074_s12, %s1458_s12  }
   0x8   : > { %s1099_s18 = sadd.s32 1, %s1045_s15   ;;  %s29_s19 = sadd.s32 1, %s1041_s14 }
   0x9   : > { %s26_s20 = ssub.s32 %s1045_s15, %s1099_s18  ;;  %p36_p0 = scmp.ne.s32.totalorder %s1041_s14, %s1037_s13 }
   0xa   : > { %p27_p1 = scmp.eq.s32.totalorder %s26_s20, 0  ;;  %p37_p2 = scmp.eq.s32.totalorder %s1045_s15, 0 }
   0xb   : > { %p42_p3 = scmp.ne.s32.totalorder %s1037_s13, %s1033_s12  ;;  %p43_p4 = scmp.eq.s32.totalorder %s1095_s16, 0 }
   0xc   : > { %s1111_s21 = scalar_select %p27_p1, %s1041_s14, %s29_s19  }
   0xd   : > { %p1113_p5 = por %p37_p2, %p36_p0  ;;  %p1117_p6 = por %p43_p4, %p42_p3 }
   0xe   : > { %p118_p7 = scmp.eq.s32.totalorder %s1095_s16, 2  ;;  %p124_p8 = scmp.eq.s32.totalorder %s764_s17, 2 }
   0xf   : > { %s1442_s23 = scalar_select %p1117_p6, 1, 0 }
  0x10   : > { %p1122_p9 = por %p118_p7, %p36_p0  ;;  %p1126_p10 = por %p124_p8, %p42_p3 }
  0x11   : > { %p766_p11 = scmp.ge.s32.totalorder %s1045_s15, 3 }
  0x12   : > { %s1443_s24 = scalar_select %p1122_p9, 1, 0 }
  0x13   : > { %s1444_s25 = scalar_select %p1126_p10, 1, 0 }
  0x14   : > { %140 = sbr.rel (%p766_p11) target bundleno = 105 (0x69), region = 16  ;;  %s1132_s26 = sand.u32 (!%p766_p11), 1, %s1041_s14  }
  0x15   : > { %s768_s27 = sshll.u32 (!%p766_p11), %s1045_s15, 6  ;;  %s767_s28 = sshll.u32 (!%p766_p11), %s1132_s26, 2 }
  0x16   : > { %s1141_s4 = scalar_lea.hbm (!%p766_p11), %s1435_s0, %s768_s27  ;;  %s148_s5 = scalar_lea.vmem (!%p766_p11), [#allocation2], %s767_s28 }
  0x17   : > { %s155_s6 = sshll.u32 (!%p766_p11), %s148_s5, 4  ;;  %s162_s7 = sand.u32 (!%p766_p11), 1, %s1045_s15   ;;  %s156_s6 = int_to_ptr.vmem [resolvable:$true] %s155_s6 }
  0x18   : > { %s145_s8 = scalar_lea.sflag (!%p766_p11), [#allocation3], %s1132_s26  ;;  %s891_s9 = scalar_lea.hbm (!%p766_p11), %s1141_s4, 64 }
  0x19   : > { %p892_p12 = scmp.ne.s32.totalorder (!%p766_p11), %s1141_s4, %s891_s9  ;;  %s895_s17 = scalar_lea.hbm (!%p766_p11), %s1435_s0, 192 }
  0x1a   : > { %p896_p1 = scmp.lt.u32.totalorder (!%p766_p11), %s1141_s4, %s1435_s0  ;;  %p897_p2 = scmp.lt.u32.totalorder (!%p766_p11), %s895_s17, %s891_s9 }
  0x1b   : > { %p893_p13 = pnand %p892_p12, %p1113_p5  ;;  %p899_p4 = scmp.lt.u32.totalorder %s891_s9, %s1141_s4 }
  0x1c   : > { %p898_p3 = por %p897_p2, %p896_p1 }
  0x1d   : > { %p894_p0 = pneg %p893_p13 }
  0x1e   : > { %p900_p7 = por %p899_p4, %p898_p3 }
  0x20   : > { %p901_p8 = pnand %p900_p7, %p894_p0 }
  0x22   : > { %904 = shalt.err (!%p901_p8)
}
  0x23   : > { %s905_s29 = scalar_lea.vmem %s156_s6, 64  ;;  %s1047_s30 = smov [#allocation2]  }
  0x24   : > { %p906_p11 = scmp.ne.s32.totalorder %s156_s6, %s905_s29  ;;  %s909_s5 = sshll.u32 %s1047_s30, 4  ;;  %s910_s5 = int_to_ptr.vmem [resolvable:$false] %s909_s5 }
  0x25   : > { %s911_s10 = scalar_lea.vmem %s910_s5, 128  ;;  %p912_p10 = scmp.lt.s32.totalorder %s156_s6, %s910_s5 }
  0x26   : > { %p907_p12 = pnand %p906_p11, %p1113_p5  ;;  %p913_p9 = scmp.lt.s32.totalorder %s911_s10, %s905_s29 }
  0x28   : > { %p908_p13 = pneg %p907_p12  ;;  %p914_p6 = por %p913_p9, %p912_p10 }
  0x2a   : > { %p915_p1 = pnand %p914_p6, %p908_p13 }
  0x2c   : > { %918 = shalt.err (!%p915_p1)
}
  0x2d   : > { %808 = dma.hbm_to_vmem [thread:$0]  (%p1113_p5), %s1141_s4, 64, %s156_s6, %s145_s8  }
  0x2e   : > { %s1169_s17 = scalar_lea.hbm %s1436_s1, %s768_s27  ;;  %s166_s19 = scalar_lea.vmem [#allocation5], %s767_s28 }
  0x2f   : > { %s173_s20 = sshll.u32 %s166_s19, 4  ;;  %s1175_s29 = scalar_lea.sflag [#allocation6], %s162_s7  ;;  %s174_s20 = int_to_ptr.vmem [resolvable:$true] %s173_s20 }
  0x30   : > { %s919_s30 = scalar_lea.hbm %s1169_s17, 64  ;;  %s923_s27 = scalar_lea.hbm %s1436_s1, 192 }
  0x31   : > { %p920_p6 = scmp.ne.s32.totalorder %s1169_s17, %s919_s30  ;;  %p924_p0 = scmp.lt.u32.totalorder %s1169_s17, %s1436_s1 }
  0x32   : > { %p925_p2 = scmp.lt.u32.totalorder %s923_s27, %s919_s30  ;;  %p927_p4 = scmp.lt.u32.totalorder %s919_s30, %s1169_s17 }
  0x33   : > { %p921_p9 = pnand %p920_p6, %p1113_p5 }
  0x34   : > { %p926_p3 = por %p925_p2, %p924_p0 }
  0x35   : > { %p922_p10 = pneg %p921_p9 }
  0x36   : > { %p928_p7 = por %p927_p4, %p926_p3 }
  0x38   : > { %p929_p8 = pnand %p928_p7, %p922_p10 }
  0x3a   : > { %932 = shalt.err (!%p929_p8)
}
  0x3b   : > { %s933_s28 = scalar_lea.vmem %s174_s20, 64  ;;  %s1048_s7 = smov [#allocation5]  }
  0x3c   : > { %p934_p11 = scmp.ne.s32.totalorder %s174_s20, %s933_s28  ;;  %s937_s10 = sshll.u32 %s1048_s7, 4  ;;  %s938_s10 = int_to_ptr.vmem [resolvable:$false] %s937_s10 }
  0x3d   : > { %s939_s9 = scalar_lea.vmem %s938_s10, 128  ;;  %p940_p1 = scmp.lt.s32.totalorder %s174_s20, %s938_s10 }
  0x3e   : > { %p935_p12 = pnand %p934_p11, %p1113_p5  ;;  %p941_p6 = scmp.lt.s32.totalorder %s939_s9, %s933_s28 }
  0x40   : > { %p936_p13 = pneg %p935_p12  ;;  %p942_p9 = por %p941_p6, %p940_p1 }
  0x42   : > { %p943_p0 = pnand %p942_p9, %p936_p13 }
  0x44   : > { %946 = shalt.err (!%p943_p0)
}
  0x45   : > { %809 = dma.hbm_to_vmem [thread:$0]  (%p1113_p5), %s1169_s17, 64, %s174_s20, %s1175_s29  }
  0x46   : > { %179 = sbr.rel (!%p1113_p5) target bundleno = 105 (0x69), region = 28  ;;  %s771_s11 = sshll.u32 (%p1113_p5), %s1132_s26, 5 }
  0x47   : > { %s772_s19 = sshll.u32 (%p1113_p5), %s1045_s15, 3  ;;  %s184_s27 = scalar_lea.vmem (%p1113_p5), [#allocation7], %s771_s11 }
  0x48   : > { %s186_s30 = ssub.s32 (%p1113_p5), 20, %s772_s19 }
  0x49   : > { %p187_p10 = scmp.lt.s32.totalorder (%p1113_p5), %s186_s30, 8 }
  0x4d   : > { %s1463_s30 = smov (!%p187_p10, %s186_s30), 8 }
  0x4e   : > { %s1199_s4 = sshll.u32 %s1463_s30, 6 }
  0x4f   : > { %s191_s6 = ssub.s32 512, %s1199_s4 }
  0x50   : > { %192 = vsyncadd %s1175_s29, %s191_s6  ;;  %p774_p2 = scmp.ne.s32.totalorder %s1199_s4, 0  ;;  %s788_s22 = sshll.u32 %s1045_s15, 9 }
  0x51   : > { %s1208_s26 = scalar_lea.hbm %s1437_s2, %s788_s22  ;;  %s197_s8 = sshll.u32 %s184_s27, 4  ;;  %s1210_s8 = int_to_ptr.vmem [resolvable:$true] %s197_s8 }
  0x52   : > { %s947_s5 = scalar_lea.hbm %s1208_s26, %s1199_s4  ;;  %s951_s10 = scalar_lea.hbm %s1437_s2, 1280 }
  0x53   : > { %p948_p5 = scmp.ne.s32.totalorder %s1208_s26, %s947_s5  ;;  %p952_p7 = scmp.lt.u32.totalorder %s1208_s26, %s1437_s2 }
  0x54   : > { %p953_p8 = scmp.lt.u32.totalorder %s951_s10, %s947_s5  ;;  %p955_p12 = scmp.lt.u32.totalorder %s947_s5, %s1208_s26 }
  0x55   : > { %p949_p3 = pnand %p948_p5, %p774_p2 }
  0x56   : > { %p954_p11 = por %p953_p8, %p952_p7 }
  0x57   : > { %p950_p4 = pneg %p949_p3 }
  0x58   : > { %p956_p13 = por %p955_p12, %p954_p11 }
  0x5a   : > { %p957_p1 = pnand %p956_p13, %p950_p4 }
  0x5c   : > { %960 = shalt.err (!%p957_p1)
}
  0x5d   : > { %s961_s19 = scalar_lea.vmem %s1210_s8, %s1199_s4  ;;  %s1049_s30 = smov [#allocation7]  }
  0x5e   : > { %p962_p6 = scmp.ne.s32.totalorder %s1210_s8, %s961_s19  ;;  %s965_s6 = sshll.u32 %s1049_s30, 4  ;;  %s966_s6 = int_to_ptr.vmem [resolvable:$false] %s965_s6 }
  0x5f   : > { %s967_s27 = scalar_lea.vmem %s966_s6, 1024  ;;  %p968_p10 = scmp.lt.s32.totalorder %s1210_s8, %s966_s6 }
  0x60   : > { %p963_p9 = pnand %p962_p6, %p774_p2  ;;  %p969_p5 = scmp.lt.s32.totalorder %s967_s27, %s961_s19 }
  0x62   : > { %p964_p0 = pneg %p963_p9  ;;  %p970_p3 = por %p969_p5, %p968_p10 }
  0x64   : > { %p971_p7 = pnand %p970_p3, %p964_p0 }
  0x66   : > { %974 = shalt.err (!%p971_p7)
}
  0x67   : > { %s1050_s22 = smov 64   ;;  %s1051_s17 = smov 4  }
  0x68   : > { %203 = dma.hbm_to_vmem [thread:$0]  (%p774_p2), %s1208_s26, %s1199_s4, %s1210_s8, %s1175_s29, %s1050_s22, %s1050_s22, %s1051_s17  }
  0x69 PF: > { %p778_p4 = scmp.ge.s32.totalorder %s1045_s15, 1  ;;  %p205_p8 = scmp.lt.s32.totalorder %s1045_s15, 4 }
  0x6b   : > { %p206_p11 = pnand %p778_p4, %p205_p8 }
  0x6c   : > { %s1240_s20 = sand.u32 (!%p206_p11), 1, %s1037_s13   ;;  %p1445_p12 = scmp.ne.s32.totalorder (!%p206_p11), %s1442_s23, 0 }
  0x6d   : > { %209 = sbr.rel (%p206_p11) target bundleno = 504 (0x1f8), region = 32  ;;  %s779_s5 = sshll.u32 (!%p206_p11), %s1240_s20, 2 }
  0x6e   : > { %s212_s28 = scalar_lea.sflag (!%p206_p11), [#allocation3], %s1240_s20  ;;  %s215_s7 = scalar_lea.vmem (!%p206_p11), [#allocation2], %s779_s5 }
  0x74   : > { %1020 = dma.done.wait (%p1445_p12), %s212_s28, 64  }
  0x75   : > { %1022 = vsyncadd (%p1445_p12), %s212_s28, 4294967232  ;;  %s220_s29 = sand.u32 1, %s1095_s16   ;;  %s1249_s26 = scalar_lea.vmem [#allocation5], %s779_s5 }
  0x76   : > { %s221_s4 = scalar_lea.sflag [#allocation6], %s220_s29 }
  0x77   : > { %1024 = dma.done.wait (%p1445_p12), %s221_s4, 576  }
  0x78   : > { %1026 = vsyncadd (%p1445_p12), %s221_s4, 4294966720  ;;  %v316_v0 = vlaneseq  ;;  %v1052_v1 = vmov 1966171168   ;;  %s781_s8 = sshll.u32 %s1240_s20, 5  ;;  %v271_v6 = vld [vmem:[%s215_s7] sm:$0xf] }
  0x79   : > { %v314_v2 = vunpack.c.l.s4 %v1052_v1  ;;  %v272_v7 = vunpack.c.l.bf16 %v271_v6  ;;  %s233_s10 = scalar_lea.vmem [#allocation7], %s781_s8  ;;  %vm292_vm0 = vcmask 261120   ;;  %v273_v48 = vld [vmem:[%s1249_s26] sm:$0xf]  ;;  %vm603_vm3 = vcmask 1041409   ;;  %s783_s23 = sshll.u32 %s1095_s16, 3 }
  0x7a   : > { %v1256_v3 = vshrl.u32 %v316_v0, 7  ;;  %v790_v8 = vld [vmem:[%s233_s10] sm:$0xff]   ;;  %v805_v11 = vld [vmem:[%s233_s10 + $0x8] sm:$0xff]   ;;  %v806_v16 = vld [vmem:[%s233_s10 + $0x10] sm:$0xff]   ;;  %v274_v55 = vunpack.c.l.bf16 %v273_v48  ;;  %vm605_vm4 = vcmask 1042434   ;;  %vm607_vm5 = vcmask 1043459  }
  0x7b   : > { %v315_v4 = vunpack.c.0.s8 %v314_v2  ;;  %v312_v12 = vcombine.high %v272_v7, %v272_v7  ;;  %v791_v13 = vunpack.c.l.bf16 %v790_v8  ;;  %v795_v18 = vunpack.c.l.bf16 %v805_v11  ;;  %v807_v31 = vld [vmem:[%s233_s10 + $0x18] sm:$0xff]   ;;  %s782_s9 = sshll.u32 %s1240_s20, 3  ;;  %s785_s11 = sshll.u32 %s1095_s16, 7 }
  0x7c   : > { %v363_v10 = vsub.s32 0, %v1256_v3  ;;  %v792_v19 = vunpack.c.h.bf16 %v790_v8  ;;  %v796_v24 = vunpack.c.h.bf16 %v805_v11  ;;  %v799_v25 = vunpack.c.l.bf16 %v806_v16  ;;  %s265_s19 = scalar_lea.vmem [#allocation8], %s782_s9  ;;  %s1392_s22 = scalar_lea.hbm %s1438_s3, %s785_s11 }
  0x7d   : > { %v318_v5 = vsub.s32 %v315_v4, %v1256_v3  ;;  %v800_v33 = vunpack.c.h.bf16 %v806_v16  ;;  %v803_v42 = vunpack.c.l.bf16 %v807_v31  ;;  %v804_v51 = vunpack.c.h.bf16 %v807_v31  ;;  %s651_s30 = sshll.u32 %s265_s19, 4  ;;  %s638_s17 = scalar_lea.sflag [#allocation4], %s1240_s20  ;;  %s1394_s30 = int_to_ptr.vmem [resolvable:$true] %s651_s30 }
  0x7e   : > { %v291_v59 = vmul.f32 %v274_v55, %v272_v7  ;;  %vm609_vm6 = vcmask 1044484   ;;  %vm611_vm10 = vcmask 1045509   ;;  %vm613_vm14 = vcmask 1046534   ;;  %s975_s5 = scalar_lea.vmem %s1394_s30, 128  ;;  %p1456_p13 = scmp.ne.s32.totalorder %s1443_s24, 0 }
  0x7f   : > { %v319_v9 = vrot.slane %v272_v7, %v318_v5  ;;  %v326_v17 = vrot.slane %v312_v12, %v318_v5  ;;  %vm615_vm15 = vcmask 1047559   ;;  %p976_p2 = scmp.ne.s32.totalorder %s1394_s30, %s975_s5  ;;  %s1053_s16 = smov [#allocation8]  }
  0x80   : > { %v293_v61 = vsel %vm292_vm0, %v291_v59, 0.0  ;;  %s979_s28 = sshll.u32 %s1053_s16, 4  ;;  %s980_s28 = int_to_ptr.vmem [resolvable:$false] %s979_s28 }
  0x81   : > { %v335_v14 = vrot.slane %v319_v9, %v318_v5  ;;  %v327_v15 = vcombine.high %v319_v9, %v319_v9  ;;  %v342_v23 = vrot.slane %v326_v17, %v318_v5  ;;  %v328_v26 = vcombine.high %v326_v17, %v326_v17  ;;  %p977_p1 = pnand %p976_p2, %p1456_p13  ;;  %s981_s7 = scalar_lea.vmem %s980_s28, 256 }
  0x82   : > { %p982_p9 = scmp.lt.s32.totalorder %s1394_s30, %s980_s28  ;;  %p983_p0 = scmp.lt.s32.totalorder %s981_s7, %s975_s5 }
  0x83   : > { %v364_v20 = vrot.slane %v335_v14, %v363_v10  ;;  %v357_v21 = vcombine.high %v335_v14, %v335_v14  ;;  %v349_v22 = vrot.slane %v327_v15, %v318_v5  ;;  %v380_v32 = vrot.slane %v342_v23, %v363_v10  ;;  %p978_p6 = pneg %p977_p1 }
  0x84   : > { %v356_v34 = vrot.slane %v328_v26, %v318_v5  ;;  %v358_v35 = vcombine.high %v342_v23, %v342_v23  ;;  %p984_p10 = por %p983_p0, %p982_p9 }
  0x85   : > { %v401_v27 = vmul.f32 %v791_v13, %v364_v20  ;;  %v372_v28 = vrot.slane %v357_v21, %v363_v10  ;;  %v368_v29 = vrot.slane %v349_v22, %v363_v10  ;;  %v359_v30 = vcombine.high %v349_v22, %v349_v22 }
  0x86   : > { %v405_v40 = vmul.f32 %v799_v25, %v380_v32  ;;  %v384_v41 = vrot.slane %v356_v34, %v363_v10  ;;  %v360_v43 = vcombine.high %v356_v34, %v356_v34  ;;  %v388_v47 = vrot.slane %v358_v35, %v363_v10  ;;  %p985_p5 = pnand %p984_p10, %p978_p6 }
  0x87   : > { %v409_v36 = vsel %vm292_vm0, %v401_v27, 0.0  ;;  %v403_v37 = vmul.f32 %v795_v18, %v372_v28  ;;  %v402_v38 = vmul.f32 %v792_v19, %v368_v29  ;;  %v376_v39 = vrot.slane %v359_v30, %v363_v10 }
  0x88   : > { %410 = vadd.xlane.f32.xlu0 %v409_v36  ;;  %v406_v50 = vmul.f32 %v800_v33, %v384_v41  ;;  %v392_v52 = vrot.slane %v360_v43, %v363_v10  ;;  %v421_v53 = vsel %vm292_vm0, %v405_v40, 0.0  ;;  %v407_v54 = vmul.f32 %v803_v42, %v388_v47 }
  0x89   : > { %v415_v44 = vsel %vm292_vm0, %v403_v37, 0.0  ;;  %v412_v45 = vsel %vm292_vm0, %v402_v38, 0.0  ;;  %v404_v46 = vmul.f32 %v796_v24, %v376_v39 }
  0x8a   : > { %416 = vadd.xlane.f32.xlu1 %v415_v44  ;;  %v424_v56 = vsel %vm292_vm0, %v406_v50, 0.0  ;;  %v408_v57 = vmul.f32 %v804_v51, %v392_v52  ;;  %v427_v58 = vsel %vm292_vm0, %v407_v54, 0.0 }
  0x8b   : > { %v418_v49 = vsel %vm292_vm0, %v404_v46, 0.0 }
  0x8c   : > { %413 = vadd.xlane.f32.xlu0 %v412_v45  ;;  %v430_v60 = vsel %vm292_vm0, %v408_v57, 0.0  ;;  %v570_v45 = vand.u32 127, %v316_v0  ;;  %vm618_vm0 = vcmask 64512  }
  0x8e   : > { %419 = vadd.xlane.f32.xlu1 %v418_v49  ;;  %v1297_v51 = vsub.s32 %v570_v45, %v1256_v3 }
  0x90   : > { %422 = vadd.xlane.f32.xlu0 %v421_v53 }
  0x92   : > { %425 = vadd.xlane.f32.xlu1 %v424_v56 }
  0x94   : > { %428 = vadd.xlane.f32.xlu0 %v427_v58 }
  0x96   : > { %431 = vadd.xlane.f32.xlu1 %v430_v60 }
  0x98   : > { %294 = vadd.xlane.f32.xlu0 %v293_v61 }
 0x115   : > { %v1271_v62 = vpop.xlane.xlu0 %410 }
 0x116   : > { %v433_v63 = vsub.f32 0.0, %v1271_v62 }
 0x117   : > { %v1274_v1 = vpop.xlane.xlu1 %416 }
 0x118   : > { %v449_v2 = vand.u32 2147483647, %v433_v63  ;;  %v435_v4 = vsub.f32 0.0, %v1274_v1  ;;  %v441_v52 = vmin.f32 %v433_v63, 0.0 }
 0x119   : > { %v1277_v5 = vpop.xlane.xlu0 %413 }
 0x11a   : > { %v457_v6 = vsub.f32 0.0, %v449_v2  ;;  %v451_v7 = vand.u32 2147483647, %v435_v4  ;;  %v434_v8 = vsub.f32 0.0, %v1277_v5  ;;  %v443_v0 = vmin.f32 %v435_v4, 0.0 }
 0x11b   : > { %v1280_v9 = vpop.xlane.xlu1 %419 }
 0x11c   : > { %v465_v10 = vmul.f32 1.442695, %v457_v6  ;;  %v459_v11 = vsub.f32 0.0, %v451_v7  ;;  %v450_v12 = vand.u32 2147483647, %v434_v8  ;;  %v436_v13 = vsub.f32 0.0, %v1280_v9 }
 0x11d   : > { %v423_v14 = vpop.xlane.xlu0 %422  ;;  %v442_v59 = vmin.f32 %v434_v8, 0.0 }
 0x11e   : > { %855 = vpow2.f32 %v465_v10  ;;  %v469_v15 = vmul.f32 1.442695, %v459_v11  ;;  %v458_v16 = vsub.f32 0.0, %v450_v12  ;;  %v437_v17 = vsub.f32 0.0, %v423_v14 }
 0x11f   : > { %v452_v18 = vand.u32 2147483647, %v436_v13  ;;  %v426_v19 = vpop.xlane.xlu1 %425  ;;  %v1302_v60 = vmin.f32 %v436_v13, 0.0 }
 0x120   : > { %857 = vpow2.f32 %v469_v15  ;;  %v467_v20 = vmul.f32 1.442695, %v458_v16  ;;  %v453_v21 = vand.u32 2147483647, %v437_v17  ;;  %v438_v23 = vsub.f32 0.0, %v426_v19 }
 0x121   : > { %v460_v22 = vsub.f32 0.0, %v452_v18  ;;  %v429_v24 = vpop.xlane.xlu0 %428  ;;  %v1306_v1 = vmin.f32 %v437_v17, 0.0 }
 0x122   : > { %859 = vpow2.f32 %v467_v20  ;;  %v461_v25 = vsub.f32 0.0, %v453_v21  ;;  %v439_v26 = vsub.f32 0.0, %v429_v24  ;;  %v454_v28 = vand.u32 2147483647, %v438_v23 }
 0x123   : > { %v471_v27 = vmul.f32 1.442695, %v460_v22  ;;  %v1283_v29 = vpop.xlane.xlu1 %431  ;;  %v1308_v63 = vmin.f32 %v438_v23, 0.0 }
 0x124   : > { %v473_v30 = vmul.f32 1.442695, %v461_v25  ;;  %v455_v31 = vand.u32 2147483647, %v439_v26  ;;  %v440_v32 = vsub.f32 0.0, %v1283_v29  ;;  %v462_v33 = vsub.f32 0.0, %v454_v28 }
 0x125   : > { %861 = vpow2.f32 %v471_v27  ;;  %v1318_v7 = vmin.f32 %v439_v26, 0.0 }
 0x126   : > { %863 = vpow2.f32 %v473_v30  ;;  %v463_v34 = vsub.f32 0.0, %v455_v31  ;;  %v456_v35 = vand.u32 2147483647, %v440_v32  ;;  %v475_v36 = vmul.f32 1.442695, %v462_v33 }
 0x128   : > { %v856_v37 = vpop.eup %855  ;;  %v477_v38 = vmul.f32 1.442695, %v463_v34  ;;  %v464_v39 = vsub.f32 0.0, %v456_v35  ;;  %865 = vpow2.f32 %v475_v36 }
 0x129   : > { %v481_v40 = vadd.f32 1.0, %v856_v37  ;;  %v484_v46 = vmul.f32 -0.5, %v856_v37  ;;  %v487_v53 = vand.u32 2147483647, %v856_v37 }
 0x12a   : > { %v858_v41 = vpop.eup %857  ;;  %867 = vpow2.f32 %v477_v38  ;;  %v479_v42 = vmul.f32 1.442695, %v464_v39 }
 0x12b   : > { %869 = vlog2.f32 %v481_v40  ;;  %v499_v43 = vadd.f32 1.0, %v858_v41  ;;  %v502_v49 = vmul.f32 -0.5, %v858_v41  ;;  %v485_v55 = vadd.f32 1.0, %v484_v46 }
 0x12c   : > { %v1288_v44 = vpop.eup %859  ;;  %871 = vpow2.f32 %v479_v42  ;;  %v505_v58 = vand.u32 2147483647, %v858_v41  ;;  %vm1312_vm1 = vcmp.lt.f32.partialorder %v487_v53, 0.0004427343 }
 0x12d   : > { %873 = vlog2.f32 %v499_v43  ;;  %v490_v47 = vadd.f32 1.0, %v1288_v44  ;;  %v493_v56 = vmul.f32 -0.5, %v1288_v44  ;;  %v503_v62 = vadd.f32 1.0, %v502_v49 }
 0x12e   : > { %v486_v9 = vmul.f32 %v856_v37, %v485_v55  ;;  %vm1324_vm2 = vcmp.lt.f32.partialorder %v505_v58, 0.0004427343  ;;  %v496_v16 = vand.u32 2147483647, %v1288_v44 }
 0x12f   : > { %v1292_v48 = vpop.eup %861  ;;  %875 = vlog2.f32 %v490_v47  ;;  %v494_v10 = vadd.f32 1.0, %v493_v56  ;;  %v504_v18 = vmul.f32 %v858_v41, %v503_v62 }
 0x130   : > { %v1294_v50 = vpop.eup %863  ;;  %v508_v54 = vadd.f32 1.0, %v1292_v48  ;;  %v511_v5 = vmul.f32 -0.5, %v1292_v48  ;;  %v514_v19 = vand.u32 2147483647, %v1292_v48  ;;  %vm497_vm7 = vcmp.lt.f32.partialorder %v496_v16, 0.0004427343 }
 0x131   : > { %v517_v57 = vadd.f32 1.0, %v1294_v50  ;;  %v520_v11 = vmul.f32 -0.5, %v1294_v50  ;;  %v495_v26 = vmul.f32 %v1288_v44, %v494_v10  ;;  %v523_v28 = vand.u32 2147483647, %v1294_v50 }
 0x132   : > { %877 = vlog2.f32 %v508_v54  ;;  %v1304_v61 = vpop.eup %865  ;;  %v512_v23 = vadd.f32 1.0, %v511_v5  ;;  %vm1340_vm8 = vcmp.lt.f32.partialorder %v514_v19, 0.0004427343 }
 0x133   : > { %879 = vlog2.f32 %v517_v57  ;;  %v526_v6 = vadd.f32 1.0, %v1304_v61  ;;  %v529_v24 = vmul.f32 -0.5, %v1304_v61  ;;  %v521_v27 = vadd.f32 1.0, %v520_v11 }
 0x134   : > { %v1310_v2 = vpop.eup %867  ;;  %v532_v33 = vand.u32 2147483647, %v1304_v61  ;;  %v513_v41 = vmul.f32 %v1292_v48, %v512_v23  ;;  %vm1346_vm9 = vcmp.lt.f32.partialorder %v523_v28, 0.0004427343 }
 0x135   : > { %v870_v8 = vpop.eup %869  ;;  %v535_v12 = vadd.f32 1.0, %v1310_v2  ;;  %881 = vlog2.f32 %v526_v6  ;;  %v538_v34 = vmul.f32 -0.5, %v1310_v2  ;;  %v530_v42 = vadd.f32 1.0, %v529_v24 }
 0x136   : > { %v1322_v13 = vpop.eup %871  ;;  %v483_v14 = vmul.f32 0.6931472, %v870_v8  ;;  %v541_v47 = vand.u32 2147483647, %v1310_v2  ;;  %vm1352_vm11 = vcmp.lt.f32.partialorder %v532_v33, 0.0004427343 }
 0x137   : > { %v874_v17 = vpop.eup %873  ;;  %883 = vlog2.f32 %v535_v12  ;;  %v544_v20 = vadd.f32 1.0, %v1322_v13  ;;  %v547_v37 = vmul.f32 -0.5, %v1322_v13  ;;  %v539_v54 = vadd.f32 1.0, %v538_v34 }
 0x138   : > { %v489_v21 = vsel %vm1312_vm1, %v486_v9, %v483_v14  ;;  %v501_v22 = vmul.f32 0.6931472, %v874_v17  ;;  %v531_v62 = vmul.f32 %v1304_v61, %v530_v42  ;;  %v550_v9 = vand.u32 2147483647, %v1322_v13 }
 0x139   : > { %v876_v25 = vpop.eup %875  ;;  %885 = vlog2.f32 %v544_v20  ;;  %v553_v35 = vsub.f32 %v441_v52, %v489_v21  ;;  %v522_v52 = vmul.f32 %v1294_v50, %v521_v27  ;;  %v548_v56 = vadd.f32 1.0, %v547_v37 }
 0x13a   : > { %v507_v30 = vsel %vm1324_vm2, %v504_v18, %v501_v22  ;;  %v492_v31 = vmul.f32 0.6931472, %v876_v25  ;;  %v540_v12 = vmul.f32 %v1310_v2, %v539_v54  ;;  %vm542_vm12 = vcmp.lt.f32.partialorder %v541_v47, 0.0004427343 }
 0x13b   : > { %v555_v39 = vsub.f32 %v443_v0, %v507_v30  ;;  %v574_v48 = vrot.slane %v553_v35, %v1297_v51  ;;  %v549_v16 = vmul.f32 %v1322_v13, %v548_v56  ;;  %v448_v2 = vmin.f32 %v440_v32, 0.0 }
 0x13c   : > { %v878_v38 = vpop.eup %877  ;;  %v498_v40 = vsel %vm497_vm7, %v495_v26, %v492_v31  ;;  %vm551_vm13 = vcmp.lt.f32.partialorder %v550_v9, 0.0004427343 }
 0x13d   : > { %v880_v43 = vpop.eup %879  ;;  %v554_v44 = vsub.f32 %v442_v59, %v498_v40  ;;  %v510_v45 = vmul.f32 0.6931472, %v878_v38  ;;  %v582_v58 = vrot.slane %v555_v39, %v1297_v51  ;;  %v626_v39 = vstv %s783_s23 }
 0x13e   : > { %v519_v49 = vmul.f32 0.6931472, %v880_v43 }
 0x13f   : > { %v578_v55 = vrot.slane %v554_v44, %v1297_v51  ;;  %v516_v0 = vsel %vm1340_vm8, %v513_v41, %v510_v45  ;;  %v882_v57 = vpop.eup %881  ;;  %v627_v41 = vadd.s32 %v626_v39, %v1256_v3 }
 0x140   : > { %v556_v59 = vsub.f32 %v1302_v60, %v516_v0  ;;  %v525_v50 = vsel %vm1346_vm9, %v522_v52, %v519_v49  ;;  %v528_v8 = vmul.f32 0.6931472, %v882_v57 }
 0x141   : > { %v884_v4 = vpop.eup %883  ;;  %v604_v5 = vsel %vm603_vm3, %v578_v55, %v574_v48  ;;  %v557_v6 = vsub.f32 %v1306_v1, %v525_v50  ;;  %vm628_vm2 = vcmp.lt.s32.totalorder %v627_v41, 20 }
 0x142   : > { %v586_v10 = vrot.slane %v556_v59, %v1297_v51  ;;  %v537_v11 = vmul.f32 0.6931472, %v884_v4  ;;  %v606_v60 = vsel %vm605_vm4, %v582_v58, %v604_v5  ;;  %v534_v61 = vsel %vm1352_vm11, %v531_v62, %v528_v8 }
 0x143   : > { %v886_v14 = vpop.eup %885  ;;  %v590_v15 = vrot.slane %v557_v6, %v1297_v51  ;;  %v558_v1 = vsub.f32 %v1308_v63, %v534_v61 }
 0x144   : > { %v543_v17 = vsel %vm542_vm12, %v540_v12, %v537_v11  ;;  %v546_v18 = vmul.f32 0.6931472, %v886_v14  ;;  %v608_v19 = vsel %vm607_vm5, %v586_v10, %v606_v60 }
 0x145   : > { %v559_v20 = vsub.f32 %v1318_v7, %v543_v17  ;;  %v610_v21 = vsel %vm609_vm6, %v590_v15, %v608_v19  ;;  %v594_v22 = vrot.slane %v558_v1, %v1297_v51  ;;  %v295_v7 = vpop.xlane.xlu0 %294 }
 0x146   : > { %v552_v23 = vsel %vm551_vm13, %v549_v16, %v546_v18  ;;  %v297_v27 = vand.u32 2147483647, %v295_v7  ;;  %v296_v40 = vmin.f32 %v295_v7, 0.0 }
 0x147   : > { %v598_v13 = vrot.slane %v559_v20, %v1297_v51  ;;  %v560_v24 = vsub.f32 %v448_v2, %v552_v23  ;;  %v612_v63 = vsel %vm611_vm10, %v594_v22, %v610_v21 }
 0x148   : > { %v298_v28 = vsub.f32 0.0, %v297_v27 }
 0x149   : > { %v602_v25 = vrot.slane %v560_v24, %v1297_v51  ;;  %v614_v26 = vsel %vm613_vm14, %v598_v13, %v612_v63 }
 0x14a   : > { %v299_v30 = vmul.f32 1.442695, %v298_v28 }
 0x14b   : > { %v616_v29 = vsel %vm615_vm15, %v602_v25, %v614_v26 }
 0x14c   : > { %v619_v32 = vsel %vm618_vm0, %v616_v29, 0.0  ;;  %887 = vpow2.f32 %v299_v30 }
 0x14d   : > { %620 = vadd.xlane.f32.xlu1 %v619_v32 }
 0x156   : > { %v888_v31 = vpop.eup %887 }
 0x157   : > { %v301_v33 = vadd.f32 1.0, %v888_v31  ;;  %v304_v34 = vmul.f32 -0.5, %v888_v31  ;;  %v307_v37 = vand.u32 2147483647, %v888_v31 }
 0x159   : > { %889 = vlog2.f32 %v301_v33  ;;  %v305_v35 = vadd.f32 1.0, %v304_v34  ;;  %vm308_vm1 = vcmp.lt.f32.partialorder %v307_v37, 0.0004427343 }
 0x15b   : > { %v306_v38 = vmul.f32 %v888_v31, %v305_v35 }
 0x163   : > { %v890_v36 = vpop.eup %889 }
 0x164   : > { %v303_v51 = vmul.f32 0.6931472, %v890_v36 }
 0x166   : > { %v309_v42 = vsel %vm308_vm1, %v306_v38, %v303_v51 }
 0x167   : > { %v310_v43 = vsub.f32 %v296_v40, %v309_v42 }
 0x1da   : > { %v621_v44 = vpop.xlane.xlu1 %620 }
 0x1db   : > { %v622_v45 = vadd.f32 %v621_v44, %v310_v43 }
 0x1dd   : > { %v629_v46 = vsel %vm628_vm2, %v622_v45, 0.0 }
 0x1de   : > { %v630_v47 = vrot.slane %v629_v46, 4 }
 0x1e0   : > { %v631_v49 = vadd.f32 %v630_v47, %v629_v46 }
 0x1e2   : > { %v632_v52 = vrot.slane %v631_v49, 2 }
 0x1e4   : > { %v633_v53 = vadd.f32 %v632_v52, %v631_v49 }
 0x1e6   : > { %v634_v54 = vrot.slane %v633_v53, 1 }
 0x1e8   : > { %v635_v48 = vadd.f32 %v634_v54, %v633_v53 }
 0x1ea   : > { %636 = vst [vmem:[%s265_s19] sm:$0xff] %v635_v48 }
 0x1eb   : > { %988 = shalt.err (!%p985_p5)
}
 0x1ec   : > { %s989_s20 = scalar_lea.hbm %s1392_s22, 128  ;;  %s993_s26 = scalar_lea.hbm %s1438_s3, 384 }
 0x1ed   : > { %p990_p3 = scmp.ne.s32.totalorder %s1392_s22, %s989_s20  ;;  %p994_p8 = scmp.lt.u32.totalorder %s1392_s22, %s1438_s3 }
 0x1ee   : > { %p995_p11 = scmp.lt.u32.totalorder %s993_s26, %s989_s20  ;;  %p997_p2 = scmp.lt.u32.totalorder %s989_s20, %s1392_s22 }
 0x1ef   : > { %p991_p7 = pnand %p990_p3, %p1456_p13 }
 0x1f0   : > { %p996_p12 = por %p995_p11, %p994_p8 }
 0x1f1   : > { %p992_p4 = pneg %p991_p7 }
 0x1f2   : > { %p998_p1 = por %p997_p2, %p996_p12 }
 0x1f4   : > { %p999_p6 = pnand %p998_p1, %p992_p4 }
 0x1f6   : > { %1002 = shalt.err (!%p999_p6)
}
 0x1f7   : > { %813 = dma.vmem_to_hbm [thread:$0]  (%p1456_p13), %s1394_s30, 128, %s1392_s22, %s638_s17  }
 0x1f8 PF: > { %p819_p9 = scmp.ge.s32.totalorder %s1045_s15, 2  ;;  %s663_s23 = sand.u32 1, %s1033_s12  }
 0x1f9   : > { %p1457_p0 = scmp.ne.s32.totalorder %s1444_s25, 0  ;;  %s664_s9 = scalar_lea.sflag [#allocation4], %s663_s23 }
 0x1fb   : > { %p816_p10 = pnand %p819_p9, %p1457_p0 }
 0x1fd   : > { %1028 = dma.done.wait (!%p816_p10), %s664_s9, 128  }
 0x1fe   : > { %1030 = vsyncadd (!%p816_p10), %s664_s9, 4294967168  ;;  %p19_p5 = scmp.ge.s32.totalorder %s1099_s18, 5   ;;  %s1458_s12 = smov %s1037_s13 }
 0x1ff   : > { %s1459_s13 = smov %s1041_s14  ;;  %s1460_s14 = smov %s1111_s21 }
 0x200   : > { %s1461_s15 = smov %s1099_s18  ;;  %21 = sbr.rel (!%p19_p5) target bundleno = 7 (0x7), region = 101 }
 0x207   :  { %669 = vsyncpa [#allocation3], 1 }
 0x208   :  { %671 = vsyncpa [#allocation3 + $0x1], 1 }
 0x209   :  { %672 = vsyncpa [#allocation6], 1 }
 0x20a   :  { %674 = vsyncpa [#allocation6 + $0x1], 1 }
 0x20b   :  { %675 = vsyncpa [#allocation4], 1 }
 0x20c   :  { %677 = vsyncpa [#allocation4 + $0x1], 1 }

</bundles_post_ra>
